<compile_context>
chip_gen: v6e
topology: v6e:2x2x1
jax: 0.10.0
libtpu: 0.0.40
codegen_flags: <defaults>
</compile_context>

<pallas_src>
import functools

import jax
import jax.numpy as jnp
from jax import lax
from jax.experimental import pallas as pl
from jax.experimental.pallas import tpu as pltpu


def _round_up(x, m):
    return ((x + m - 1) // m) * m


def _classifier_kernel(x_ref, wt_ref, b_ref, o_ref, acc_ref, *, n_classes):
    k = pl.program_id(1)

    @pl.when(k == 0)
    def _():
        acc_ref[...] = jnp.zeros_like(acc_ref)

    # MXU matmul with f32 accumulation across the (possibly tiled) feature axis.
    acc_ref[...] += jnp.dot(
        x_ref[...], wt_ref[...], preferred_element_type=jnp.float32
    )

    @pl.when(k == pl.num_programs(1) - 1)
    def _():
        logits = acc_ref[...] + b_ref[...].astype(jnp.float32)     # (TB, Cp)
        if n_classes != logits.shape[1]:
            # Kernel-side mask of padded class lanes (robust to any wrapper-side
            # weight re-layout / quantization).
            col = lax.broadcasted_iota(jnp.int32, logits.shape, 1)
            logits = jnp.where(col < n_classes, logits, -1e30)
        m = jnp.max(logits, axis=1, keepdims=True)
        e = jnp.exp(logits - m)                                     # padded -> 0
        denom = jnp.sum(e, axis=1, keepdims=True)
        # Exact division: kernel is MXU/DMA bound; approx reciprocal only hurts
        # accuracy (rows must sum to 1).
        o_ref[...] = (e / denom).astype(o_ref.dtype)


def classifier_forward(x, wt, bias=None, *, tb_max=512, tk_max=2048,
                       out_dtype=None, vmem_budget_frac=0.75):
    """Forward pass of ClassiferModel.

    x:    (B, D) activations (f32 or bf16)
    wt:   (D, C) weight, already transposed from the PyTorch (C, D) layout
    bias: (C,) or None
    """
    B, D = x.shape
    D_w, C = wt.shape
    assert D_w == D, "weight must be passed pre-transposed as (D, C)"
    out_dtype = jnp.dtype(out_dtype or x.dtype)

    # Weights in the activation dtype (bf16 x -> bf16 W -> fast MXU path and
    # half the resident-weight VMEM); accumulation stays f32 in-kernel.
    wt = wt.astype(x.dtype)
    b_full = (jnp.zeros((C,), jnp.float32) if bias is None
              else bias.astype(jnp.float32))

    # ---- lane-dense class axis: pad C to a multiple of 128 -----------------
    C_pad = _round_up(C, 128)
    wt_p = jnp.pad(wt, ((0, 0), (0, C_pad - C))) if C_pad != C else wt
    b_p = (jnp.pad(b_full, (0, C_pad - C)) if C_pad != C else b_full)
    b_p = b_p.reshape(1, C_pad)

    x_item = x.dtype.itemsize
    w_item = wt_p.dtype.itemsize
    o_item = out_dtype.itemsize
    sublane = max(8, 32 // x_item)          # 8 (f32), 16 (bf16), 32 (int8/fp8)

    # ---- generation-aware VMEM budget ---------------------------------------
    try:
        vmem_cap = int(pltpu.get_tpu_info().vmem_capacity_bytes)
    except Exception:
        vmem_cap = 64 * 1024 * 1024          # conservative: v7x per-TensorCore
    vmem_budget = int(vmem_cap * vmem_budget_frac)

    # ---- feature (reduction) tiling -----------------------------------------
    if D <= tk_max:
        TK, n_k = D, 1                       # single resident K block
    else:
        TK = _round_up(min(tk_max, D), 128)
        n_k = pl.cdiv(D, TK)
    D_pad = n_k * TK
    resident_w = (n_k == 1)
    n_xbuf = 2
    n_wbuf = 1 if resident_w else 2          # Buffered(1) on the resident weight
    n_obuf = 2

    # ---- batch tile: fit VMEM budget, balance tiles, sublane-round ----------
    w_bytes = n_wbuf * TK * C_pad * w_item + 2 * C_pad * 4
    row_bytes = (n_xbuf * TK * x_item + n_obuf * C_pad * o_item
                 + C_pad * 4)                # x tiles + out tiles + f32 acc
    tb_fit = ((vmem_budget - w_bytes) // max(row_bytes, 1)) // sublane * sublane
    tb_cap = max(sublane, min(tb_max, tb_fit))
    n_tiles = pl.cdiv(B, tb_cap)
    TB = _round_up(pl.cdiv(B, n_tiles), sublane)   # balanced tiles
    n_tiles = pl.cdiv(B, TB)
    B_pad = n_tiles * TB

    # Pad activations (batch rows sliced off below; zero feature padding is a
    # no-op in the matmul). Pad weight along the feature axis if D was tiled.
    x_p = (jnp.pad(x, ((0, B_pad - B), (0, D_pad - D)))
           if (B_pad, D_pad) != (B, D) else x)
    if D_pad != D:
        wt_p = jnp.pad(wt_p, ((0, D_pad - D), (0, 0)))

    # ---- explicit scoped-VMEM limit from actual tile sizes (+ headroom) -----
    vmem_needed = (n_xbuf * TB * TK * x_item          # streamed x tiles
                   + n_wbuf * TK * C_pad * w_item     # (resident) weight
                   + 2 * C_pad * 4                    # bias
                   + n_obuf * TB * C_pad * o_item     # output tiles
                   + TB * C_pad * 4                   # f32 accumulator scratch
                   + 3 * TB * C_pad * 4)              # softmax body temporaries
    vmem_limit = int(min(vmem_cap, max(32 * 1024 * 1024,
                                       int(vmem_needed * 1.25))))

    flops = 2 * B_pad * D_pad * C_pad + 5 * B_pad * C_pad
    bytes_accessed = (B_pad * D_pad * x_item + D_pad * C_pad * w_item
                      + C_pad * 4 + B_pad * C_pad * o_item)

    kernel = functools.partial(_classifier_kernel, n_classes=C)

    def _build(single_buffer_resident):
        if single_buffer_resident and resident_w:
            wt_spec = pl.BlockSpec((TK, C_pad), lambda i, k: (k, 0),
                                   pipeline_mode=pl.Buffered(1))
            b_spec = pl.BlockSpec((1, C_pad), lambda i, k: (0, 0),
                                  pipeline_mode=pl.Buffered(1))
        else:
            wt_spec = pl.BlockSpec((TK, C_pad), lambda i, k: (k, 0))
            b_spec = pl.BlockSpec((1, C_pad), lambda i, k: (0, 0))
        return pl.pallas_call(
            kernel,
            out_shape=jax.ShapeDtypeStruct((B_pad, C_pad), out_dtype),
            grid_spec=pltpu.PrefetchScalarGridSpec(
                num_scalar_prefetch=0,
                grid=(n_tiles, n_k),
                in_specs=[
                    pl.BlockSpec((TB, TK), lambda i, k: (i, k)),   # x streams
                    wt_spec,                                        # W^T
                    b_spec,                                         # bias
                ],
                out_specs=pl.BlockSpec((TB, C_pad), lambda i, k: (i, 0)),
                scratch_shapes=[pltpu.VMEM((TB, C_pad), jnp.float32)],
            ),
            compiler_params=pltpu.CompilerParams(
                dimension_semantics=("parallel", "arbitrary"),
                vmem_limit_bytes=vmem_limit,
            ),
            cost_estimate=pl.CostEstimate(
                flops=flops,
                transcendentals=B_pad * C_pad,
                bytes_accessed=bytes_accessed,
            ),
        )

    try:
        out = _build(True)(x_p, wt_p, b_p)
    except Exception:
        # Fallback if this Pallas build rejects single-buffered BlockSpecs.
        out = _build(False)(x_p, wt_p, b_p)

    # Drop batch / class padding outside the kernel (cheap XLA slice).
    return out[:B, :C]


def init_params(key, input_size, output_size, use_bias=True):
    # Xavier-normal init (gain=1.0) like torch.nn.init.xavier_normal_, zeros
    # for bias.  Weight is produced directly in the transposed (D, C) layout
    # so no per-call transpose sits on the forward hot path.
    # (Seeds differ from torch's manual_seed(42), but the scheme matches.)
    std = (2.0 / (input_size + output_size)) ** 0.5
    wt = std * jax.random.normal(key, (input_size, output_size), dtype=jnp.float32)
    b = jnp.zeros((output_size,), dtype=jnp.float32) if use_bias else None
    return wt, b


if __name__ == "__main__":
    key = jax.random.PRNGKey(0)
    k_x, k_w = jax.random.split(key)

    batch = 8
    input_size = 32
    output_size = 16

    x = jax.random.normal(k_x, (batch, input_size), dtype=jnp.float32)
    wt, bias = init_params(k_w, input_size, output_size, use_bias=True)

    out = jax.block_until_ready(classifier_forward(x, wt, bias))

    # Sanity check against pure-JAX reference (exact division in-kernel, f32).
    ref = jax.nn.softmax(x @ wt + bias, axis=1)
    assert out.shape == (batch, output_size)
    assert jnp.allclose(out, ref, atol=1e-4, rtol=1e-4)
    assert jnp.allclose(jnp.sum(out, axis=1), 1.0, atol=1e-4)

    # Also exercise the bias=None path once.
    out_nb = jax.block_until_ready(classifier_forward(x, wt, None))
    ref_nb = jax.nn.softmax(x @ wt, axis=1)
    assert jnp.allclose(out_nb, ref_nb, atol=1e-4, rtol=1e-4)

    print("KERNEL_OK")
</pallas_src>

<mosaic_0001>
module attributes {stable_mosaic.version = 11 : i64} {
  func.func @_classifier_kernel(%arg0: i32, %arg1: i32, %arg2: memref<8x32xf32, #tpu.memory_space<vmem>>, %arg3: memref<32x128xf32, #tpu.memory_space<vmem>>, %arg4: memref<1x128xf32, #tpu.memory_space<vmem>>, %arg5: memref<8x128xf32, #tpu.memory_space<vmem>>, %arg6: memref<8x128xf32, #tpu.memory_space<vmem>>) attributes {dimension_semantics = [#tpu.dimension_semantics<parallel>, #tpu.dimension_semantics<arbitrary>], iteration_bounds = array<i64: 1, 1>, scalar_prefetch = 0 : i64, scratch_operands = 1 : i64, tpu.core_type = #tpu.core_type<tc>, window_params = [{transform_indices = @transform_0, window_bounds = array<i64: 8, 32>}, {pipeline_mode = #tpu.pipeline_mode<synchronous>, transform_indices = @transform_1, window_bounds = array<i64: 32, 128>}, {pipeline_mode = #tpu.pipeline_mode<synchronous>, transform_indices = @transform_2, window_bounds = array<i64: 1, 128>}, {transform_indices = @transform_3, window_bounds = array<i64: 8, 128>}]} {
    %c0_i32 = arith.constant 0 : i32
    %0 = arith.cmpi eq, %arg1, %c0_i32 : i32
    %1 = arith.extui %0 : i1 to i32
    %c0_i32_0 = arith.constant 0 : i32
    %2 = arith.cmpi ne, %1, %c0_i32_0 : i32
    scf.if %2 {
      %cst_10 = arith.constant 0.000000e+00 : f32
      %12 = vector.broadcast %cst_10 : f32 to vector<8x128xf32>
      %c0_11 = arith.constant 0 : index
      %c0_12 = arith.constant 0 : index
      %13 = vector.load %arg6[%c0_11, %c0_12] : memref<8x128xf32, #tpu.memory_space<vmem>>, vector<8x128xf32>
      tpu.vector_store %arg6[%c0_11, %c0_12], %12 {strides = array<i32>} : memref<8x128xf32, #tpu.memory_space<vmem>>, vector<8x128xf32>,
    } else {
    }
    %c0 = arith.constant 0 : index
    %c0_1 = arith.constant 0 : index
    %3 = vector.load %arg6[%c0, %c0_1] : memref<8x128xf32, #tpu.memory_space<vmem>>, vector<8x128xf32>
    %c0_2 = arith.constant 0 : index
    %c0_3 = arith.constant 0 : index
    %4 = vector.load %arg2[%c0_2, %c0_3] : memref<8x32xf32, #tpu.memory_space<vmem>>, vector<8x32xf32>
    %c0_4 = arith.constant 0 : index
    %c0_5 = arith.constant 0 : index
    %5 = vector.load %arg3[%c0_4, %c0_5] : memref<32x128xf32, #tpu.memory_space<vmem>>, vector<32x128xf32>
    %cst = arith.constant dense<0.000000e+00> : vector<8x128xf32>
    %6 = tpu.matmul %4, %5, %cst {dimension_numbers = #tpu.dot_dimension_numbers<[1], [0], [0], [1], [0, 0, 1, 1], [], []>} : vector<8x32xf32>, vector<32x128xf32>, vector<8x128xf32> -> vector<8x128xf32>
    %7 = arith.addf %3, %6 : vector<8x128xf32>
    %c0_6 = arith.constant 0 : index
    %c0_7 = arith.constant 0 : index
    %8 = vector.load %arg6[%c0_6, %c0_7] : memref<8x128xf32, #tpu.memory_space<vmem>>, vector<8x128xf32>
    tpu.vector_store %arg6[%c0_6, %c0_7], %7 {strides = array<i32>} : memref<8x128xf32, #tpu.memory_space<vmem>>, vector<8x128xf32>,
    %c0_i32_8 = arith.constant 0 : i32
    %9 = arith.cmpi eq, %arg1, %c0_i32_8 : i32
    %10 = arith.extui %9 : i1 to i32
    %c0_i32_9 = arith.constant 0 : i32
    %11 = arith.cmpi ne, %10, %c0_i32_9 : i32
    scf.if %11 {
      %c0_10 = arith.constant 0 : index
      %c0_11 = arith.constant 0 : index
      %12 = vector.load %arg6[%c0_10, %c0_11] : memref<8x128xf32, #tpu.memory_space<vmem>>, vector<8x128xf32>
      %c0_12 = arith.constant 0 : index
      %c0_13 = arith.constant 0 : index
      %13 = vector.load %arg4[%c0_12, %c0_13] : memref<1x128xf32, #tpu.memory_space<vmem>>, vector<1x128xf32>
      %14 = vector.broadcast %13 : vector<1x128xf32> to vector<8x128xf32>
      %15 = arith.addf %12, %14 : vector<8x128xf32>
      %16 = tpu.iota {dimensions = array<i32: 1>} : vector<8x128xi32>
      %c16_i32 = arith.constant 16 : i32
      %17 = vector.broadcast %c16_i32 : i32 to vector<8x128xi32>
      %18 = arith.cmpi slt, %16, %17 : vector<8x128xi32>
      %cst_14 = arith.constant -1.000000e+30 : f32
      %19 = vector.broadcast %cst_14 : f32 to vector<8x128xf32>
      %20 = arith.select %18, %15, %19 : vector<8x128xi1>, vector<8x128xf32>
      %cst_15 = arith.constant dense<0xFF800000> : vector<8xf32>
      %21 = vector.multi_reduction <maximumf>, %20, %cst_15 [1] : vector<8x128xf32> to vector<8xf32>
      %22 = vector.shape_cast %21 : vector<8xf32> to vector<8x1xf32>
      %23 = vector.broadcast %22 : vector<8x1xf32> to vector<8x128xf32>
      %24 = arith.subf %20, %23 : vector<8x128xf32>
      %25 = math.exp %24 : vector<8x128xf32>
      %cst_16 = arith.constant dense<0.000000e+00> : vector<8xf32>
      %26 = vector.multi_reduction <add>, %25, %cst_16 [1] : vector<8x128xf32> to vector<8xf32>
      %27 = vector.shape_cast %26 : vector<8xf32> to vector<8x1xf32>
      %28 = vector.broadcast %27 : vector<8x1xf32> to vector<8x128xf32>
      %29 = arith.divf %25, %28 : vector<8x128xf32>
      %c0_17 = arith.constant 0 : index
      %c0_18 = arith.constant 0 : index
      %30 = vector.load %arg5[%c0_17, %c0_18] : memref<8x128xf32, #tpu.memory_space<vmem>>, vector<8x128xf32>
      tpu.vector_store %arg5[%c0_17, %c0_18], %29 {strides = array<i32>} : memref<8x128xf32, #tpu.memory_space<vmem>>, vector<8x128xf32>,
    } else {
    }
    return
  }
  func.func @transform_0(%arg0: i32, %arg1: i32) -> (i32, i32) {
    %c0_i32 = arith.constant 0 : i32
    return %arg0, %arg1 : i32, i32
  }
  func.func @transform_1(%arg0: i32, %arg1: i32) -> (i32, i32) {
    %c0_i32 = arith.constant 0 : i32
    %c0_i32_0 = arith.constant 0 : i32
    return %arg1, %c0_i32 : i32, i32
  }
  func.func @transform_2(%arg0: i32, %arg1: i32) -> (i32, i32) {
    %c0_i32 = arith.constant 0 : i32
    %c0_i32_0 = arith.constant 0 : i32
    %c0_i32_1 = arith.constant 0 : i32
    return %c0_i32, %c0_i32_0 : i32, i32
  }
  func.func @transform_3(%arg0: i32, %arg1: i32) -> (i32, i32) {
    %c0_i32 = arith.constant 0 : i32
    %c0_i32_0 = arith.constant 0 : i32
    return %arg0, %c0_i32 : i32, i32
  }
}

module attributes {stable_mosaic.version = 11 : i64} {
  func.func @_classifier_kernel(%arg0: i32, %arg1: i32, %arg2: memref<8x32xf32, #tpu.memory_space<vmem>>, %arg3: memref<32x128xf32, #tpu.memory_space<vmem>>, %arg4: memref<1x128xf32, #tpu.memory_space<vmem>>, %arg5: memref<8x128xf32, #tpu.memory_space<vmem>>, %arg6: memref<8x128xf32, #tpu.memory_space<vmem>>) attributes {dimension_semantics = [#tpu.dimension_semantics<parallel>, #tpu.dimension_semantics<arbitrary>], iteration_bounds = array<i64: 1, 1>, scalar_prefetch = 0 : i64, scratch_operands = 1 : i64, tpu.core_type = #tpu.core_type<tc>, window_params = [{transform_indices = @transform_0, window_bounds = array<i64: 8, 32>}, {transform_indices = @transform_1, window_bounds = array<i64: 32, 128>}, {pipeline_mode = #tpu.pipeline_mode<synchronous>, transform_indices = @transform_2, window_bounds = array<i64: 1, 128>}, {transform_indices = @transform_3, window_bounds = array<i64: 8, 128>}]} {
    %c0_i32 = arith.constant 0 : i32
    %0 = arith.cmpi eq, %arg1, %c0_i32 : i32
    %1 = arith.extui %0 : i1 to i32
    %c0_i32_0 = arith.constant 0 : i32
    %2 = arith.cmpi ne, %1, %c0_i32_0 : i32
    scf.if %2 {
      %cst_10 = arith.constant 0.000000e+00 : f32
      %12 = vector.broadcast %cst_10 : f32 to vector<8x128xf32>
      %c0_11 = arith.constant 0 : index
      %c0_12 = arith.constant 0 : index
      %13 = vector.load %arg6[%c0_11, %c0_12] : memref<8x128xf32, #tpu.memory_space<vmem>>, vector<8x128xf32>
      tpu.vector_store %arg6[%c0_11, %c0_12], %12 {strides = array<i32>} : memref<8x128xf32, #tpu.memory_space<vmem>>, vector<8x128xf32>,
    } else {
    }
    %c0 = arith.constant 0 : index
    %c0_1 = arith.constant 0 : index
    %3 = vector.load %arg6[%c0, %c0_1] : memref<8x128xf32, #tpu.memory_space<vmem>>, vector<8x128xf32>
    %c0_2 = arith.constant 0 : index
    %c0_3 = arith.constant 0 : index
    %4 = vector.load %arg2[%c0_2, %c0_3] : memref<8x32xf32, #tpu.memory_space<vmem>>, vector<8x32xf32>
    %c0_4 = arith.constant 0 : index
    %c0_5 = arith.constant 0 : index
    %5 = vector.load %arg3[%c0_4, %c0_5] : memref<32x128xf32, #tpu.memory_space<vmem>>, vector<32x128xf32>
    %cst = arith.constant dense<0.000000e+00> : vector<8x128xf32>
    %6 = tpu.matmul %4, %5, %cst {dimension_numbers = #tpu.dot_dimension_numbers<[1], [0], [0], [1], [0, 0, 1, 1], [], []>} : vector<8x32xf32>, vector<32x128xf32>, vector<8x128xf32> -> vector<8x128xf32>
    %7 = arith.addf %3, %6 : vector<8x128xf32>
    %c0_6 = arith.constant 0 : index
    %c0_7 = arith.constant 0 : index
    %8 = vector.load %arg6[%c0_6, %c0_7] : memref<8x128xf32, #tpu.memory_space<vmem>>, vector<8x128xf32>
    tpu.vector_store %arg6[%c0_6, %c0_7], %7 {strides = array<i32>} : memref<8x128xf32, #tpu.memory_space<vmem>>, vector<8x128xf32>,
    %c0_i32_8 = arith.constant 0 : i32
    %9 = arith.cmpi eq, %arg1, %c0_i32_8 : i32
    %10 = arith.extui %9 : i1 to i32
    %c0_i32_9 = arith.constant 0 : i32
    %11 = arith.cmpi ne, %10, %c0_i32_9 : i32
    scf.if %11 {
      %c0_10 = arith.constant 0 : index
      %c0_11 = arith.constant 0 : index
      %12 = vector.load %arg6[%c0_10, %c0_11] : memref<8x128xf32, #tpu.memory_space<vmem>>, vector<8x128xf32>
      %c0_12 = arith.constant 0 : index
      %c0_13 = arith.constant 0 : index
      %13 = vector.load %arg4[%c0_12, %c0_13] : memref<1x128xf32, #tpu.memory_space<vmem>>, vector<1x128xf32>
      %14 = vector.broadcast %13 : vector<1x128xf32> to vector<8x128xf32>
      %15 = arith.addf %12, %14 : vector<8x128xf32>
      %16 = tpu.iota {dimensions = array<i32: 1>} : vector<8x128xi32>
      %c16_i32 = arith.constant 16 : i32
      %17 = vector.broadcast %c16_i32 : i32 to vector<8x128xi32>
      %18 = arith.cmpi slt, %16, %17 : vector<8x128xi32>
      %cst_14 = arith.constant -1.000000e+30 : f32
      %19 = vector.broadcast %cst_14 : f32 to vector<8x128xf32>
      %20 = arith.select %18, %15, %19 : vector<8x128xi1>, vector<8x128xf32>
      %cst_15 = arith.constant dense<0xFF800000> : vector<8xf32>
      %21 = vector.multi_reduction <maximumf>, %20, %cst_15 [1] : vector<8x128xf32> to vector<8xf32>
      %22 = vector.shape_cast %21 : vector<8xf32> to vector<8x1xf32>
      %23 = vector.broadcast %22 : vector<8x1xf32> to vector<8x128xf32>
      %24 = arith.subf %20, %23 : vector<8x128xf32>
      %25 = math.exp %24 : vector<8x128xf32>
      %cst_16 = arith.constant dense<0.000000e+00> : vector<8xf32>
      %26 = vector.multi_reduction <add>, %25, %cst_16 [1] : vector<8x128xf32> to vector<8xf32>
      %27 = vector.shape_cast %26 : vector<8xf32> to vector<8x1xf32>
      %28 = vector.broadcast %27 : vector<8x1xf32> to vector<8x128xf32>
      %29 = arith.divf %25, %28 : vector<8x128xf32>
      %c0_17 = arith.constant 0 : index
      %c0_18 = arith.constant 0 : index
      %30 = vector.load %arg5[%c0_17, %c0_18] : memref<8x128xf32, #tpu.memory_space<vmem>>, vector<8x128xf32>
      tpu.vector_store %arg5[%c0_17, %c0_18], %29 {strides = array<i32>} : memref<8x128xf32, #tpu.memory_space<vmem>>, vector<8x128xf32>,
    } else {
    }
    return
  }
  func.func @transform_0(%arg0: i32, %arg1: i32) -> (i32, i32) {
    %c0_i32 = arith.constant 0 : i32
    return %arg0, %arg1 : i32, i32
  }
  func.func @transform_1(%arg0: i32, %arg1: i32) -> (i32, i32) {
    %c0_i32 = arith.constant 0 : i32
    %c0_i32_0 = arith.constant 0 : i32
    return %arg1, %c0_i32 : i32, i32
  }
  func.func @transform_2(%arg0: i32, %arg1: i32) -> (i32, i32) {
    %c0_i32 = arith.constant 0 : i32
    %c0_i32_0 = arith.constant 0 : i32
    %c0_i32_1 = arith.constant 0 : i32
    return %c0_i32, %c0_i32_0 : i32, i32
  }
  func.func @transform_3(%arg0: i32, %arg1: i32) -> (i32, i32) {
    %c0_i32 = arith.constant 0 : i32
    %c0_i32_0 = arith.constant 0 : i32
    return %arg0, %c0_i32 : i32, i32
  }
}

</mosaic_0001>

<bundles_post_ra>
// kernel: tpu_custom_call.1
= control target key start
LH: loop header
LB: loop body
LE: loop exit
PB: predicated region body
PF: predicated region fallthrough
CT: control target
= control target key end

     0   :  { %8 = vsyncpa [#allocation4], 0  ;;  %s304_s0 = inlined_call_operand.hbm [shape: f32[8,32], index: 0, kind: input, shape index: {}]   ;;  %s305_s1 = inlined_call_operand.hbm [shape: f32[32,128], index: 1, kind: input, shape index: {}]   ;;  %s306_s2 = inlined_call_operand.vmem [shape: f32[1,128], index: 2, kind: input, shape index: {}]   ;;  %s307_s3 = inlined_call_operand.hbm [shape: f32[8,128], index: 3, kind: output, shape index: {}]  }
   0x1   :  { %9 = vsyncpa [#allocation7], 0 }
   0x2   :  { %10 = vsyncpa [#allocation5], 0  ;;  %s265_s12 = smov [#allocation3]   ;;  %s266_s14 = smov [#allocation6]  }
   0x3   :  { %s17_s13 = sshll.u32 %s265_s12, 4  ;;  %s26_s15 = sshll.u32 %s266_s14, 4  ;;  %s18_s13 = int_to_ptr.vmem [resolvable:$true] %s17_s13  ;;  %s27_s15 = int_to_ptr.vmem [resolvable:$true] %s26_s15 }
   0x4   :  { %s207_s16 = scalar_lea.vmem %s18_s13, 128  ;;  %p212_p1 = scmp.lt.s32.totalorder %s18_s13, %s18_s13 }
   0x5   :  { %p208_p0 = scmp.ne.s32.totalorder %s18_s13, %s207_s16  ;;  %p213_p2 = scmp.lt.s32.totalorder %s207_s16, %s207_s16 }
   0x7   :  { %p214_p3 = por %p213_p2, %p212_p1 }
   0x9   :  { %p215_p4 = pnand %p214_p3, %p208_p0 }
   0xb   :  { %218 = shalt.err (!%p215_p4)
}
   0xc   :  { %20 = dma.hbm_to_vmem [thread:$0]  %s304_s0, 128, %s18_s13, [#allocation4]  }
   0xd   :  { %s227_s19 = scalar_lea.vmem %s27_s15, 512  ;;  %p232_p6 = scmp.lt.s32.totalorder %s27_s15, %s27_s15 }
   0xe   :  { %p228_p5 = scmp.ne.s32.totalorder %s27_s15, %s227_s19  ;;  %p233_p7 = scmp.lt.s32.totalorder %s227_s19, %s227_s19 }
  0x10   :  { %p234_p8 = por %p233_p7, %p232_p6 }
  0x12   :  { %p235_p9 = pnand %p234_p8, %p228_p5 }
  0x14   :  { %238 = shalt.err (!%p235_p9)
}
  0x15   :  { %s267_s20 = smov 128   ;;  %s268_s21 = smov 8  }
  0x16   :  { %32 = dma.hbm_to_vmem [thread:$0]  %s305_s1, 512, %s27_s15, [#allocation7], %s267_s20, %s267_s20, %s268_s21  }
  0x17   :  { %259 = dma.done.wait [#allocation4], 128  }
  0x18   :  { %260 = vsyncadd [#allocation4], 4294967168 }
  0x19   :  { %261 = dma.done.wait [#allocation7], 512  }
  0x1a   :  { %262 = vsyncadd [#allocation7], 4294966784  ;;  %v269_v0 = vmov 0.0   ;;  %vm270_vm0 = vmmov 0   ;;  %v51_v1 = vld [vmem:[#allocation6 + $0x18] sm:$0xff]  ;;  %v50_v2 = vld [vmem:[#allocation6 + $0x10] sm:$0xff]  ;;  %v140_v6 = vlaneseq }
  0x1b   :  { %177 = vmatprep.subr.mxu0 %v269_v0  ;;  %185 = vmatprep.mubr.msk.f32.mxu0 %vm270_vm0, %v269_v0  ;;  %v49_v3 = vld [vmem:[#allocation6 + $0x8] sm:$0xff]  ;;  %v48_v4 = vld [vmem:[#allocation6] sm:$0xff]  ;;  %v47_v5 = vld [vmem:[#allocation3] sm:$0xff]  ;;  %vm52_vm1 = vcmask 261120   ;;  %s271_s24 = smov [#allocation8]  }
  0x1c   :  { %178 = vmatpush3.msra.mxu0 %v51_v1  ;;  %v141_v7 = vand.u32 127, %v140_v6  ;;  %v171_v8 = vld [vmem:[%s306_s2] ss:$0 sm:$0xff]  ;;  %s160_s25 = sshll.u32 %s271_s24, 4  ;;  %s161_s25 = int_to_ptr.vmem [resolvable:$true] %s160_s25 }
  0x1d   :  { %179 = vmatprep.subr.mxu0 %v269_v0  ;;  %s239_s2 = scalar_lea.vmem %s161_s25, 128  ;;  %p244_p11 = scmp.lt.s32.totalorder %s161_s25, %s161_s25 }
  0x1e   :  { %180 = vmatpush3.msra.mxu0 %v50_v2  ;;  %vm142_vm2 = vcmp.lt.s32.totalorder %v141_v7, 16  ;;  %p240_p10 = scmp.ne.s32.totalorder %s161_s25, %s239_s2  ;;  %p245_p12 = scmp.lt.s32.totalorder %s239_s2, %s239_s2 }
  0x1f   :  { %181 = vmatprep.subr.mxu0 %v269_v0 }
  0x20   :  { %182 = vmatpush3.msra.mxu0 %v49_v3  ;;  %p246_p13 = por %p245_p12, %p244_p11 }
  0x21   :  { %183 = vmatprep.subr.mxu0 %v269_v0 }
  0x22   :  { %184 = vmatpush3.msra.mxu0 %v48_v4  ;;  %p247_p0 = pnand %p246_p13, %p240_p10 }
  0x23   :  { %186 = vmatmul.mubr.msk.f32.vlgmr.msra.gmra.mxu0 %vm52_vm1, %v47_v5 }
  0xe3   :  { %v122_v9 = vpop.f32.mrf.mxu0 }
  0xe4   :  { %v139_v10 = vadd.f32 %v171_v8, %v122_v9 }
  0xe5   :  { %v187_v11 = vpop.f32.mrf.mxu0 }
  0xe6   :  { %v143_v12 = vsel %vm142_vm2, %v139_v10, -1e+30 }
  0xe7   :  { %144 = vmax.xlane.f32.xlu0 %v143_v12 }
 0x170   :  { %v145_v13 = vpop.xlane.xlu0 %144 }
 0x171   :  { %v146_v14 = vsub.f32 %v143_v12, %v145_v13 }
 0x173   :  { %v147_v15 = vmul.f32 1.442695, %v146_v14 }
 0x175   :  { %195 = vpow2.f32 %v147_v15 }
 0x182   :  { %v196_v16 = vpop.eup %195 }
 0x183   :  { %149 = vadd.xlane.f32.xlu0 %v196_v16 }
 0x20c   :  { %v150_v17 = vpop.xlane.xlu0 %149 }
 0x20d   :  { %197 = vrcp.f32 %v150_v17 }
 0x21a   :  { %v198_v18 = vpop.eup %197 }
 0x21b   :  { %v152_v19 = vmul.f32 %v198_v18, %v196_v16 }
 0x21d   :  { %153 = vst [vmem:[#allocation8] sm:$0xff] %v152_v19 }
 0x21e   :  { %250 = shalt.err (!%p247_p0)
}
 0x21f   :  { %163 = dma.vmem_to_hbm [thread:$0]  %s161_s25, 128, %s307_s3, [#allocation5]  }
 0x220   :  { %263 = dma.done.wait [#allocation5], 128  }
 0x221   :  { %264 = vsyncadd [#allocation5], 4294967168 }
 0x222   :  { %167 = vsyncpa [#allocation4], 1 }
 0x223   :  { %168 = vsyncpa [#allocation7], 1 }
 0x224   :  { %169 = vsyncpa [#allocation5], 1 }

// kernel: tpu_custom_call.1
= control target key start
LH: loop header
LB: loop body
LE: loop exit
PB: predicated region body
PF: predicated region fallthrough
CT: control target
= control target key end

     0   :  { %8 = vsyncpa [#allocation4], 0  ;;  %s304_s0 = inlined_call_operand.hbm [shape: f32[8,32], index: 0, kind: input, shape index: {}]   ;;  %s305_s1 = inlined_call_operand.hbm [shape: f32[32,128], index: 1, kind: input, shape index: {}]   ;;  %s306_s2 = inlined_call_operand.vmem [shape: f32[1,128], index: 2, kind: input, shape index: {}]   ;;  %s307_s3 = inlined_call_operand.hbm [shape: f32[8,128], index: 3, kind: output, shape index: {}]  }
   0x1   :  { %9 = vsyncpa [#allocation7], 0 }
   0x2   :  { %10 = vsyncpa [#allocation5], 0  ;;  %s265_s12 = smov [#allocation3]   ;;  %s266_s14 = smov [#allocation6]  }
   0x3   :  { %s17_s13 = sshll.u32 %s265_s12, 4  ;;  %s26_s15 = sshll.u32 %s266_s14, 4  ;;  %s18_s13 = int_to_ptr.vmem [resolvable:$true] %s17_s13  ;;  %s27_s15 = int_to_ptr.vmem [resolvable:$true] %s26_s15 }
   0x4   :  { %s207_s16 = scalar_lea.vmem %s18_s13, 128  ;;  %p212_p1 = scmp.lt.s32.totalorder %s18_s13, %s18_s13 }
   0x5   :  { %p208_p0 = scmp.ne.s32.totalorder %s18_s13, %s207_s16  ;;  %p213_p2 = scmp.lt.s32.totalorder %s207_s16, %s207_s16 }
   0x7   :  { %p214_p3 = por %p213_p2, %p212_p1 }
   0x9   :  { %p215_p4 = pnand %p214_p3, %p208_p0 }
   0xb   :  { %218 = shalt.err (!%p215_p4)
}
   0xc   :  { %20 = dma.hbm_to_vmem [thread:$0]  %s304_s0, 128, %s18_s13, [#allocation4]  }
   0xd   :  { %s227_s19 = scalar_lea.vmem %s27_s15, 512  ;;  %p232_p6 = scmp.lt.s32.totalorder %s27_s15, %s27_s15 }
   0xe   :  { %p228_p5 = scmp.ne.s32.totalorder %s27_s15, %s227_s19  ;;  %p233_p7 = scmp.lt.s32.totalorder %s227_s19, %s227_s19 }
  0x10   :  { %p234_p8 = por %p233_p7, %p232_p6 }
  0x12   :  { %p235_p9 = pnand %p234_p8, %p228_p5 }
  0x14   :  { %238 = shalt.err (!%p235_p9)
}
  0x15   :  { %s267_s20 = smov 128   ;;  %s268_s21 = smov 8  }
  0x16   :  { %32 = dma.hbm_to_vmem [thread:$0]  %s305_s1, 512, %s27_s15, [#allocation7], %s267_s20, %s267_s20, %s268_s21  }
  0x17   :  { %259 = dma.done.wait [#allocation4], 128  }
  0x18   :  { %260 = vsyncadd [#allocation4], 4294967168 }
  0x19   :  { %261 = dma.done.wait [#allocation7], 512  }
  0x1a   :  { %262 = vsyncadd [#allocation7], 4294966784  ;;  %v269_v0 = vmov 0.0   ;;  %vm270_vm0 = vmmov 0   ;;  %v51_v1 = vld [vmem:[#allocation6 + $0x18] sm:$0xff]  ;;  %v50_v2 = vld [vmem:[#allocation6 + $0x10] sm:$0xff]  ;;  %v140_v6 = vlaneseq }
  0x1b   :  { %177 = vmatprep.subr.mxu0 %v269_v0  ;;  %185 = vmatprep.mubr.msk.f32.mxu0 %vm270_vm0, %v269_v0  ;;  %v49_v3 = vld [vmem:[#allocation6 + $0x8] sm:$0xff]  ;;  %v48_v4 = vld [vmem:[#allocation6] sm:$0xff]  ;;  %v47_v5 = vld [vmem:[#allocation3] sm:$0xff]  ;;  %vm52_vm1 = vcmask 261120   ;;  %s271_s24 = smov [#allocation8]  }
  0x1c   :  { %178 = vmatpush3.msra.mxu0 %v51_v1  ;;  %v141_v7 = vand.u32 127, %v140_v6  ;;  %v171_v8 = vld [vmem:[%s306_s2] ss:$0 sm:$0xff]  ;;  %s160_s25 = sshll.u32 %s271_s24, 4  ;;  %s161_s25 = int_to_ptr.vmem [resolvable:$true] %s160_s25 }
  0x1d   :  { %179 = vmatprep.subr.mxu0 %v269_v0  ;;  %s239_s2 = scalar_lea.vmem %s161_s25, 128  ;;  %p244_p11 = scmp.lt.s32.totalorder %s161_s25, %s161_s25 }
  0x1e   :  { %180 = vmatpush3.msra.mxu0 %v50_v2  ;;  %vm142_vm2 = vcmp.lt.s32.totalorder %v141_v7, 16  ;;  %p240_p10 = scmp.ne.s32.totalorder %s161_s25, %s239_s2  ;;  %p245_p12 = scmp.lt.s32.totalorder %s239_s2, %s239_s2 }
  0x1f   :  { %181 = vmatprep.subr.mxu0 %v269_v0 }
  0x20   :  { %182 = vmatpush3.msra.mxu0 %v49_v3  ;;  %p246_p13 = por %p245_p12, %p244_p11 }
  0x21   :  { %183 = vmatprep.subr.mxu0 %v269_v0 }
  0x22   :  { %184 = vmatpush3.msra.mxu0 %v48_v4  ;;  %p247_p0 = pnand %p246_p13, %p240_p10 }
  0x23   :  { %186 = vmatmul.mubr.msk.f32.vlgmr.msra.gmra.mxu0 %vm52_vm1, %v47_v5 }
  0xe3   :  { %v122_v9 = vpop.f32.mrf.mxu0 }
  0xe4   :  { %v139_v10 = vadd.f32 %v171_v8, %v122_v9 }
  0xe5   :  { %v187_v11 = vpop.f32.mrf.mxu0 }
  0xe6   :  { %v143_v12 = vsel %vm142_vm2, %v139_v10, -1e+30 }
  0xe7   :  { %144 = vmax.xlane.f32.xlu0 %v143_v12 }
 0x170   :  { %v145_v13 = vpop.xlane.xlu0 %144 }
 0x171   :  { %v146_v14 = vsub.f32 %v143_v12, %v145_v13 }
 0x173   :  { %v147_v15 = vmul.f32 1.442695, %v146_v14 }
 0x175   :  { %195 = vpow2.f32 %v147_v15 }
 0x182   :  { %v196_v16 = vpop.eup %195 }
 0x183   :  { %149 = vadd.xlane.f32.xlu0 %v196_v16 }
 0x20c   :  { %v150_v17 = vpop.xlane.xlu0 %149 }
 0x20d   :  { %197 = vrcp.f32 %v150_v17 }
 0x21a   :  { %v198_v18 = vpop.eup %197 }
 0x21b   :  { %v152_v19 = vmul.f32 %v198_v18, %v196_v16 }
 0x21d   :  { %153 = vst [vmem:[#allocation8] sm:$0xff] %v152_v19 }
 0x21e   :  { %250 = shalt.err (!%p247_p0)
}
 0x21f   :  { %163 = dma.vmem_to_hbm [thread:$0]  %s161_s25, 128, %s307_s3, [#allocation5]  }
 0x220   :  { %263 = dma.done.wait [#allocation5], 128  }
 0x221   :  { %264 = vsyncadd [#allocation5], 4294967168 }
 0x222   :  { %167 = vsyncpa [#allocation4], 1 }
 0x223   :  { %168 = vsyncpa [#allocation7], 1 }
 0x224   :  { %169 = vsyncpa [#allocation5], 1 }

</bundles_post_ra>
